<compile_context>
chip_gen: v5e
topology: v5e:2x2
jax: 0.10.0
libtpu: 0.0.40
codegen_flags: <defaults>
</compile_context>

<pallas_src>
import jax
import jax.numpy as jnp
from jax.experimental import pallas as pl
from jax.experimental.pallas import tpu as pltpu


def _round_up(x: int, m: int) -> int:
    return ((x + m - 1) // m) * m


def _make_ctc_kernel(blank: int, num_classes: int, t_valid: int, tile_t: int):
    def kernel(e_ref, out_ref, carry_ref):
        i = pl.program_id(0)

        # "No previous frame" sentinel before the first tile.
        @pl.when(i == 0)
        def _():
            carry_ref[...] = jnp.full(carry_ref.shape, -1, jnp.int32)

        e = e_ref[...]                                   # (C, TILE_T) f32

        # First-occurrence argmax over the class (sublane) axis:
        # max, then min class index attaining the max (matches np/torch argmax).
        m = jnp.max(e, axis=0, keepdims=True)            # (1, TILE_T)
        cls = jax.lax.broadcasted_iota(jnp.int32, e.shape, 0)
        masked = jnp.where(e == m, cls, jnp.int32(num_classes))
        idx = jnp.min(masked, axis=0, keepdims=True)     # (1, TILE_T) int32

        # prev[t] = idx[t-1]; lane 0's prev comes from the previous tile's
        # last column, carried in VMEM scratch (-1 before the first tile).
        lane = jax.lax.broadcasted_iota(jnp.int32, idx.shape, 1)
        prev_in_tile = pltpu.roll(idx, shift=1, axis=1)
        prev_carry = pltpu.roll(carry_ref[...], shift=1, axis=1)
        prev = jnp.where(lane == 0, prev_carry, prev_in_tile)

        # Mask lanes past the true sequence length (padding of the last tile).
        valid = (lane + i * tile_t) < t_valid

        # Keep the first element of every run, drop blanks and padding.
        keep = (idx != jnp.int32(blank)) & (idx != prev) & valid

        # Packed output: class index if kept, -1 otherwise (lane-dense).
        out_ref[...] = jnp.where(keep, idx, jnp.int32(-1))

        # Carry this tile's argmax row for the next tile's boundary.
        carry_ref[...] = idx

    return kernel


def greedy_ctc_decode_indices(emission: jax.Array, blank: int = 0,
                              tile_t: int = 512) -> jax.Array:
    """emission: (T, C) float.  Returns (1, T_pad) int32 where each lane is the
    kept class index for that frame, or -1 for dropped frames (duplicate of
    previous frame, blank, or time padding)."""
    T, C = emission.shape
    tile = min(tile_t, _round_up(T, 128))        # lane-aligned tile of time steps
    t_pad = _round_up(T, tile)
    num_tiles = t_pad // tile

    # Layout flip in the wrapper: classes -> sublanes, time -> lanes.
    e_t = jnp.transpose(emission.astype(jnp.float32))        # (C, T)
    if t_pad != T:
        e_t = jnp.pad(e_t, ((0, 0), (0, t_pad - T)))

    kernel = _make_ctc_kernel(blank, C, T, tile)
    out = pl.pallas_call(
        kernel,
        out_shape=jax.ShapeDtypeStruct((1, t_pad), jnp.int32),
        grid_spec=pltpu.PrefetchScalarGridSpec(
            num_scalar_prefetch=0,
            grid=(num_tiles,),
            in_specs=[pl.BlockSpec((C, tile), lambda i: (0, i))],
            out_specs=pl.BlockSpec((1, tile), lambda i: (0, i)),
            scratch_shapes=[pltpu.VMEM((1, tile), jnp.int32)],
        ),
        compiler_params=pltpu.CompilerParams(
            # Cross-tile carry creates a sequential dependency over time tiles.
            dimension_semantics=("arbitrary",),
        ),
    )(e_t)
    return out


class GreedyCTCDecoder:
    def __init__(self, labels, blank=0):
        self.labels = labels
        self.blank = blank

    def __call__(self, emission: jax.Array, tile_t: int = 512) -> str:
        packed = greedy_ctc_decode_indices(emission, blank=self.blank,
                                           tile_t=tile_t)
        jax.block_until_ready(packed)
        packed_host = jax.device_get(packed)[0]           # single D2H copy
        return "".join(self.labels[int(i)] for i in packed_host if i >= 0)


def _reference_decode(emission_np, labels, blank=0):
    import numpy as np
    indices = np.argmax(emission_np, axis=-1)
    out = []
    prev = None
    for i in indices:
        if i != prev:
            out.append(i)
        prev = i
    return "".join(labels[int(i)] for i in out if i != blank)


if __name__ == "__main__":
    import numpy as np

    C = 32
    labels = "-abcdefghijklmnopqrstuvwxyz'.?! "   # 32 chars, blank = '-' at 0
    assert len(labels) == C

    decoder = GreedyCTCDecoder(labels, blank=0)
    key = jax.random.PRNGKey(0)

    # Small shape matching the module's typical use (single tile).
    T = 16
    emission = jax.random.normal(key, (T, C), dtype=jnp.float32)
    decoded = decoder(emission)
    ref = _reference_decode(np.asarray(jax.device_get(emission)), labels, blank=0)
    assert decoded == ref, f"mismatch (T=16): kernel={decoded!r} ref={ref!r}"

    # Longer utterance with a small tile to exercise multi-tile streaming,
    # the cross-tile run carry, and last-tile padding.
    T2 = 300
    emission2 = jax.random.normal(jax.random.PRNGKey(1), (T2, C), dtype=jnp.float32)
    decoded2 = decoder(emission2, tile_t=128)
    ref2 = _reference_decode(np.asarray(jax.device_get(emission2)), labels, blank=0)
    assert decoded2 == ref2, f"mismatch (T=300): kernel={decoded2!r} ref={ref2!r}"

    print("KERNEL_OK")
</pallas_src>

<mosaic_0001>
module attributes {stable_mosaic.version = 11 : i64} {
  func.func @kernel(%arg0: i32, %arg1: memref<32x128xf32, #tpu.memory_space<vmem>>, %arg2: memref<1x128xi32, #tpu.memory_space<vmem>>, %arg3: memref<1x128xi32, #tpu.memory_space<vmem>>) attributes {dimension_semantics = [#tpu.dimension_semantics<arbitrary>], iteration_bounds = array<i64: 1>, scalar_prefetch = 0 : i64, scratch_operands = 1 : i64, tpu.core_type = #tpu.core_type<tc>, window_params = [{transform_indices = @transform_0, window_bounds = array<i64: 32, 128>}, {transform_indices = @transform_1, window_bounds = array<i64: 1, 128>}]} {
    %c0_i32 = arith.constant 0 : i32
    %0 = arith.cmpi eq, %arg0, %c0_i32 : i32
    %1 = arith.extui %0 : i1 to i32
    %c0_i32_0 = arith.constant 0 : i32
    %2 = arith.cmpi ne, %1, %c0_i32_0 : i32
    scf.if %2 {
      %c-1_i32_12 = arith.constant -1 : i32
      %34 = vector.broadcast %c-1_i32_12 : i32 to vector<1x128xi32>
      %c0_13 = arith.constant 0 : index
      %c0_14 = arith.constant 0 : index
      %35 = vector.load %arg3[%c0_13, %c0_14] : memref<1x128xi32, #tpu.memory_space<vmem>>, vector<1x128xi32>
      tpu.vector_store %arg3[%c0_13, %c0_14], %34 {strides = array<i32>} : memref<1x128xi32, #tpu.memory_space<vmem>>, vector<1x128xi32>,
    } else {
    }
    %c0 = arith.constant 0 : index
    %c0_1 = arith.constant 0 : index
    %3 = vector.load %arg1[%c0, %c0_1] : memref<32x128xf32, #tpu.memory_space<vmem>>, vector<32x128xf32>
    %cst = arith.constant dense<0xFF800000> : vector<128xf32>
    %4 = vector.multi_reduction <maximumf>, %3, %cst [0] : vector<32x128xf32> to vector<128xf32>
    %5 = vector.shape_cast %4 : vector<128xf32> to vector<1x128xf32>
    %6 = tpu.iota {dimensions = array<i32: 0>} : vector<32x128xi32>
    %7 = vector.broadcast %5 : vector<1x128xf32> to vector<32x128xf32>
    %8 = arith.cmpf oeq, %3, %7 : vector<32x128xf32>
    %c32_i32 = arith.constant 32 : i32
    %9 = vector.broadcast %c32_i32 : i32 to vector<32x128xi32>
    %10 = arith.select %8, %6, %9 : vector<32x128xi1>, vector<32x128xi32>
    %cst_2 = arith.constant dense<2147483647> : vector<128xi32>
    %11 = vector.multi_reduction <minsi>, %10, %cst_2 [0] : vector<32x128xi32> to vector<128xi32>
    %12 = vector.shape_cast %11 : vector<128xi32> to vector<1x128xi32>
    %13 = tpu.iota {dimensions = array<i32: 1>} : vector<1x128xi32>
    %c1_i32 = arith.constant 1 : i32
    %14 = tpu.dynamic_rotate %12 by %c1_i32 dim 1 : vector<1x128xi32>, i32 -> vector<1x128xi32>
    %c0_3 = arith.constant 0 : index
    %c0_4 = arith.constant 0 : index
    %15 = vector.load %arg3[%c0_3, %c0_4] : memref<1x128xi32, #tpu.memory_space<vmem>>, vector<1x128xi32>
    %c1_i32_5 = arith.constant 1 : i32
    %16 = tpu.dynamic_rotate %15 by %c1_i32_5 dim 1 : vector<1x128xi32>, i32 -> vector<1x128xi32>
    %c0_i32_6 = arith.constant 0 : i32
    %17 = vector.broadcast %c0_i32_6 : i32 to vector<1x128xi32>
    %18 = arith.cmpi eq, %13, %17 : vector<1x128xi32>
    %19 = arith.select %18, %16, %14 : vector<1x128xi1>, vector<1x128xi32>
    %c128_i32 = arith.constant 128 : i32
    %20 = arith.muli %arg0, %c128_i32 : i32
    %21 = vector.broadcast %20 : i32 to vector<1x128xi32>
    %22 = arith.addi %13, %21 : vector<1x128xi32>
    %c16_i32 = arith.constant 16 : i32
    %23 = vector.broadcast %c16_i32 : i32 to vector<1x128xi32>
    %24 = arith.cmpi slt, %22, %23 : vector<1x128xi32>
    %c0_i32_7 = arith.constant 0 : i32
    %25 = vector.broadcast %c0_i32_7 : i32 to vector<1x128xi32>
    %26 = arith.cmpi ne, %12, %25 : vector<1x128xi32>
    %27 = arith.cmpi ne, %12, %19 : vector<1x128xi32>
    %28 = arith.andi %26, %27 : vector<1x128xi1>
    %29 = arith.andi %28, %24 : vector<1x128xi1>
    %c-1_i32 = arith.constant -1 : i32
    %30 = vector.broadcast %c-1_i32 : i32 to vector<1x128xi32>
    %31 = arith.select %29, %12, %30 : vector<1x128xi1>, vector<1x128xi32>
    %c0_8 = arith.constant 0 : index
    %c0_9 = arith.constant 0 : index
    %32 = vector.load %arg2[%c0_8, %c0_9] : memref<1x128xi32, #tpu.memory_space<vmem>>, vector<1x128xi32>
    tpu.vector_store %arg2[%c0_8, %c0_9], %31 {strides = array<i32>} : memref<1x128xi32, #tpu.memory_space<vmem>>, vector<1x128xi32>,
    %c0_10 = arith.constant 0 : index
    %c0_11 = arith.constant 0 : index
    %33 = vector.load %arg3[%c0_10, %c0_11] : memref<1x128xi32, #tpu.memory_space<vmem>>, vector<1x128xi32>
    tpu.vector_store %arg3[%c0_10, %c0_11], %12 {strides = array<i32>} : memref<1x128xi32, #tpu.memory_space<vmem>>, vector<1x128xi32>,
    return
  }
  func.func @transform_0(%arg0: i32) -> (i32, i32) {
    %c0_i32 = arith.constant 0 : i32
    %c0_i32_0 = arith.constant 0 : i32
    return %c0_i32, %arg0 : i32, i32
  }
  func.func @transform_1(%arg0: i32) -> (i32, i32) {
    %c0_i32 = arith.constant 0 : i32
    %c0_i32_0 = arith.constant 0 : i32
    return %c0_i32, %arg0 : i32, i32
  }
}

</mosaic_0001>

<bundles_post_ra>
// kernel: tpu_custom_call.1
= control target key start
LH: loop header
LB: loop body
LE: loop exit
PB: predicated region body
PF: predicated region fallthrough
CT: control target
= control target key end

     0   :  { %6 = vsyncpa [#allocation4], 0  ;;  %s188_s0 = inlined_call_operand.hbm [shape: f32[32,128], index: 0, kind: input, shape index: {}]   ;;  %s189_s1 = inlined_call_operand.hbm [shape: s32[1,128], index: 1, kind: output, shape index: {}]  }
   0x1   :  { %7 = vsyncpa [#allocation5], 0  ;;  %s12_s8 = sshll.u32 %s188_s0, 4  ;;  %s166_s9 = smov [#allocation3]   ;;  %s13_s8 = int_to_ptr.hbm [resolvable:$true] %s12_s8 }
   0x2   :  { %s14_s10 = sshll.u32 %s166_s9, 4  ;;  %s167_s11 = smov 128   ;;  %s15_s10 = int_to_ptr.vmem [resolvable:$true] %s14_s10 }
   0x3   :  { %s168_s12 = smov 8  }
   0x4   :  { %20 = dma.hbm_to_vmem [thread:$0]  %s13_s8, 512, %s15_s10, [#allocation4], %s167_s11, %s167_s11, %s168_s12  }
   0x5   :  { %162 = dma.done.wait [#allocation4], 512  }
   0x6   :  { %163 = vsyncadd [#allocation4], 4294966784  ;;  %v30_v0 = vld [vmem:[#allocation3] sm:$0xff]  ;;  %v31_v1 = vld [vmem:[#allocation3 + $0x8] sm:$0xff]  ;;  %v169_v7 = vmov 4294967295   ;;  %v43_v9 = vlaneseq  ;;  %s170_s0 = smov 1  }
   0x7   :  { %v32_v2 = vld [vmem:[#allocation3 + $0x10] sm:$0xff]  ;;  %v33_v3 = vld [vmem:[#allocation3 + $0x18] sm:$0xff]  ;;  %v34_v4 = vmax.f32 %v30_v0, %v31_v1  ;;  %29 = vst [vmem:[#allocation2] sm:$0x1] %v169_v7  ;;  %s171_s13 = smov [#allocation6]   ;;  %s98_s17 = sshll.u32 %s189_s1, 4  ;;  %s99_s17 = int_to_ptr.hbm [resolvable:$true] %s98_s17 }
   0x8   :  { %v35_v5 = vmax.f32 %v32_v2, %v33_v3  ;;  %v44_v12 = vshrl.u32 %v43_v9, 7  ;;  %v72_v34 = vand.u32 127, %v43_v9  ;;  %s96_s14 = sshll.u32 %s171_s13, 4  ;;  %s97_s14 = int_to_ptr.vmem [resolvable:$true] %s96_s14 }
   0xa   :  { %v36_v6 = vmax.f32 %v34_v4, %v35_v5  ;;  %v45_v15 = vadd.s32 8, %v44_v12  ;;  %v46_v16 = vadd.s32 16, %v44_v12  ;;  %v47_v17 = vadd.s32 24, %v44_v12 }
   0xb   :  { %vm78_vm10 = vcmp.eq.s32.totalorder %v72_v34, 0  ;;  %vm83_vm12 = vcmp.lt.s32.totalorder %v72_v34, 16 }
   0xc   :  { %v37_v8 = vrot.slane %v36_v6, 4 }
   0xe   :  { %v38_v10 = vmax.f32 %v36_v6, %v37_v8  ;;  %v75_v32 = vld [vmem:[#allocation2] sm:$0x1] }
  0x10   :  { %v39_v11 = vrot.slane %v38_v10, 2 }
  0x12   :  { %v40_v13 = vmax.f32 %v38_v10, %v39_v11 }
  0x14   :  { %v41_v14 = vrot.slane %v40_v13, 1 }
  0x16   :  { %v42_v18 = vmax.f32 %v40_v13, %v41_v14 }
  0x18   :  { %vm48_vm0 = vcmp.eq.f32.partialorder %v30_v0, %v42_v18  ;;  %vm49_vm1 = vcmp.eq.f32.partialorder %v31_v1, %v42_v18  ;;  %vm50_vm2 = vcmp.eq.f32.partialorder %v32_v2, %v42_v18  ;;  %vm51_vm3 = vcmp.eq.f32.partialorder %v33_v3, %v42_v18 }
  0x19   :  { %v52_v19 = vsel %vm48_vm0, %v44_v12, 32  ;;  %v53_v20 = vsel %vm49_vm1, %v45_v15, 32  ;;  %v54_v21 = vsel %vm50_vm2, %v46_v16, 32  ;;  %v55_v22 = vsel %vm51_vm3, %v47_v17, 32 }
  0x1a   :  { %vm56_vm4 = vcmp.lt.s32.totalorder %v52_v19, %v53_v20  ;;  %vm58_vm5 = vcmp.lt.s32.totalorder %v54_v21, %v55_v22 }
  0x1b   :  { %v57_v23 = vsel %vm56_vm4, %v52_v19, %v53_v20  ;;  %v59_v24 = vsel %vm58_vm5, %v54_v21, %v55_v22 }
  0x1c   :  { %vm60_vm6 = vcmp.lt.s32.totalorder %v57_v23, %v59_v24 }
  0x1d   :  { %v61_v25 = vsel %vm60_vm6, %v57_v23, %v59_v24 }
  0x1e   :  { %v62_v26 = vrot.slane %v61_v25, 4 }
  0x20   :  { %vm63_vm7 = vcmp.lt.s32.totalorder %v61_v25, %v62_v26 }
  0x21   :  { %v64_v27 = vsel %vm63_vm7, %v61_v25, %v62_v26 }
  0x22   :  { %v65_v28 = vrot.slane %v64_v27, 2 }
  0x24   :  { %vm66_vm8 = vcmp.lt.s32.totalorder %v64_v27, %v65_v28 }
  0x25   :  { %v67_v29 = vsel %vm66_vm8, %v64_v27, %v65_v28 }
  0x26   :  { %v68_v30 = vrot.slane %v67_v29, 1 }
  0x28   :  { %vm69_vm9 = vcmp.lt.s32.totalorder %v67_v29, %v68_v30 }
  0x29   :  { %v70_v31 = vsel %vm69_vm9, %v67_v29, %v68_v30 }
  0x2a   :  { %73 = vrot.lane.b32.xlu0 %v70_v31, %s170_s0  ;;  %90 = vst [vmem:[#allocation2] sm:$0x1] %v70_v31  ;;  %vm84_vm11 = vcmp.ne.s32.totalorder %v70_v31, 0 }
  0x32   :  { %76 = vrot.lane.b32.xlu0 %v75_v32, %s170_s0 }
  0x9c   :  { %v74_v33 = vpop.permute.xlu0 %73 }
  0xa4   :  { %v77_v35 = vpop.permute.xlu0 %76 }
  0xa5   :  { %v79_v36 = vsel %vm78_vm10, %v77_v35, %v74_v33 }
  0xa6   :  { %vm85_vm13 = vcmp.ne.s32.totalorder %v70_v31, %v79_v36 }
  0xa7   :  { %vm86_vm14 = vmand %vm84_vm11, %vm85_vm13 }
  0xa8   :  { %vm87_vm15 = vmand %vm86_vm14, %vm83_vm12 }
  0xa9   :  { %v88_v37 = vsel %vm87_vm15, %v70_v31, 4294967295 }
  0xaa   :  { %89 = vst [vmem:[#allocation6] sm:$0x1] %v88_v37 }
  0xab   :  { %101 = dma.vmem_to_hbm [thread:$0]  %s97_s14, 16, %s99_s17, [#allocation5]  }
  0xac   :  { %164 = dma.done.wait [#allocation5], 16  }
  0xad   :  { %165 = vsyncadd [#allocation5], 4294967280 }
  0xae   :  { %106 = vsyncpa [#allocation4], 1 }
  0xaf   :  { %107 = vsyncpa [#allocation5], 1 }

</bundles_post_ra>
